<compile_context>
chip_gen: v7x
topology: tpu7x:2x2x1
jax: 0.10.0
libtpu: 0.0.40
codegen_flags: <defaults>
</compile_context>

<pallas_src>
import jax
import jax.numpy as jnp
from jax.experimental import pallas as pl
from jax.experimental.pallas import tpu as pltpu


# ---------------------------------------------------------------------------
# Small helpers
# ---------------------------------------------------------------------------
def _round_up(x, m):
    return ((x + m - 1) // m) * m


def _tpu_config():
    """(tensorcores_per_chip, default max K-tile) from the device kind."""
    try:
        kind = jax.devices()[0].device_kind.lower()
    except Exception:
        kind = ""
    if "7" in kind:                      # v7x: 2 TensorCores/chip, 64 MiB VMEM
        return 2, 8192
    if "v5 lite" in kind or "v5e" in kind or "v5lite" in kind:
        return 1, 6144                   # v5e: most bandwidth/VMEM constrained
    return 1, 8192                       # v6e and others: single TC, big tiles


def _largest_tile(total, t_max, min_tiles=1):
    """Largest multiple of 128 that divides `total` (itself a 128-multiple),
    is <= t_max, and (when possible) yields >= min_tiles tiles."""
    units = total // 128
    cap = max(1, min(t_max // 128, units))
    if min_tiles > 1:
        cap = max(1, min(cap, units // min_tiles))
    for u in range(cap, 0, -1):
        if units % u == 0:
            return u * 128
    return 128


def _vmem_limit(need_bytes):
    # Raise above v5e's 16 MiB scoped default, stay under v7x's 64 MiB physical.
    return int(min(max(need_bytes + (8 << 20), 32 << 20), 56 << 20))


def _maybe_pad2d(a, shape, dtype):
    """Pad/cast a 2-D array to `shape`/`dtype`; no-op if it already matches."""
    if a.shape == tuple(shape) and a.dtype == dtype:
        return a
    a = a.astype(dtype)
    pads = [(0, s - d) for d, s in zip(a.shape, shape)]
    return jnp.pad(a, pads)


def _prep_bias(b, Np):
    """Bias -> f32, shape (1, Np); no-op if already prepared."""
    if b.ndim == 2 and b.shape == (1, Np) and b.dtype == jnp.float32:
        return b
    b = b.reshape(-1).astype(jnp.float32)
    return jnp.pad(b, (0, Np - b.shape[0])).reshape(1, Np)


def prepare_linear_params(w, b):
    """One-time pad to lane-aligned shapes + cast: bf16 weight, (1,Np) f32 bias."""
    K, N = w.shape
    Kp, Np = _round_up(K, 128), _round_up(N, 128)
    return _maybe_pad2d(w, (Kp, Np), jnp.bfloat16), _prep_bias(b, Np)


# ---------------------------------------------------------------------------
# Kernel 1: tiled  relu(x @ w + b)      (proj1 / proj1_vf)
#   grid = (N_tiles, K_tiles) -- reduction axis last ("arbitrary"),
#   accumulation directly into the VMEM-resident output block.
# ---------------------------------------------------------------------------
def _linear_relu_kernel(x_ref, w_ref, b_ref, o_ref):
    k = pl.program_id(1)

    @pl.when(k == 0)
    def _():
        o_ref[...] = jnp.zeros_like(o_ref)

    # bf16 x bf16 -> f32 accumulate on the MXU, into the resident output block
    o_ref[...] += jnp.dot(x_ref[...], w_ref[...],
                          preferred_element_type=jnp.float32)

    @pl.when(k == pl.num_programs(1) - 1)
    def _():
        o_ref[...] = jnp.maximum(o_ref[...] + b_ref[...], 0.0)


def linear_relu(x, w, b, *, n_out=None, tk_max=None, tn_max=None):
    """relu(x @ w + b).  x:(M,K) float, w:(K or Kp, N or Np), b -> (M, n_out) f32.

    Weights may be passed pre-padded/pre-cast (preferred: zero per-call copies).
    M (= batch*frames) is tiny, so it lives in one sublane-padded tile; K
    (reduction) and N are tiled and pipelined with large lane-aligned slabs.
    """
    M, _ = x.shape
    Kw, Nw = w.shape
    if n_out is None:
        n_out = Nw
    cores, default_tk = _tpu_config()
    if tk_max is None:
        tk_max = default_tk

    Kp = _round_up(Kw, 128)
    Np = _round_up(Nw, 128)
    tm = _round_up(max(M, 1), 16)                      # bf16 sublane packing

    tk = _largest_tile(Kp, tk_max)                     # big K slabs (>=4 MiB in prod)
    tn_cap = Np if tn_max is None else min(tn_max, Np)
    tn = _largest_tile(Np, tn_cap, min_tiles=cores)    # full N on 1-TC, split on v7x

    xp = _maybe_pad2d(x, (tm, Kp), jnp.bfloat16)       # per-call, small
    wp = _maybe_pad2d(w, (Kp, Np), jnp.bfloat16)       # no-op when pre-padded
    bp = _prep_bias(b, Np)                             # no-op when pre-padded

    vmem_need = (2 * tm * tk * 2 + 2 * tk * tn * 2 +   # double-buffered x / w tiles
                 tm * tn * 4 + 2 * tn * 4)             # resident output + bias
    cost = pl.CostEstimate(
        flops=2 * tm * Kp * Np,
        transcendentals=0,
        bytes_accessed=Kp * Np * 2 + tm * Kp * 2 + tm * Np * 4 + Np * 4)

    out = pl.pallas_call(
        _linear_relu_kernel,
        out_shape=jax.ShapeDtypeStruct((tm, Np), jnp.float32),
        grid=(Np // tn, Kp // tk),                     # reduction axis last
        in_specs=[
            pl.BlockSpec((tm, tk), lambda j, k: (0, k)),
            pl.BlockSpec((tk, tn), lambda j, k: (k, j)),
            pl.BlockSpec((1, tn), lambda j, k: (0, j)),
        ],
        out_specs=pl.BlockSpec((tm, tn), lambda j, k: (0, j)),
        compiler_params=pltpu.CompilerParams(
            dimension_semantics=("parallel", "arbitrary"),
            vmem_limit_bytes=_vmem_limit(vmem_need)),
        cost_estimate=cost,
    )(xp, wp, bp)
    return out[:M, :n_out]


# ---------------------------------------------------------------------------
# Kernel 2: fused  proj3( relu(proj2(x)) )
#   grid = (groups, tiles_per_group); h cached in VMEM once per group.
# ---------------------------------------------------------------------------
def _proj2_proj3_kernel(x_ref, w2_ref, b2_ref, w3_ref, b3_ref, o_ref, h_ref):
    @pl.when(pl.program_id(1) == 0)
    def _():
        h = jnp.dot(x_ref[...], w2_ref[...], preferred_element_type=jnp.float32)
        h_ref[...] = jnp.maximum(h + b2_ref[...], 0.0).astype(h_ref.dtype)

    o_ref[...] = jnp.dot(h_ref[...], w3_ref[...],
                         preferred_element_type=jnp.float32) + b3_ref[...]


def proj2_proj3(x, w2, b2, w3, b3, *, n_out=None, tn3_max=4096):
    """relu(x @ w2 + b2) @ w3 + b3, w3 streamed in large N slabs.

    x / w2 / b2 stay VMEM-resident; h is computed once per column group and
    cached (bf16) in scratch.  Weights may be passed pre-padded/pre-cast.
    """
    M, _ = x.shape
    K2, N2 = w2.shape
    K3, N3 = w3.shape
    if n_out is None:
        n_out = N3
    cores, _ = _tpu_config()

    Kp = _round_up(K2, 128)
    N2p = _round_up(max(N2, K3), 128)
    N3p = _round_up(N3, 128)
    tm = _round_up(max(M, 1), 16)

    tn3 = _largest_tile(N3p, min(tn3_max, N3p), min_tiles=cores)
    n_tiles = N3p // tn3
    G = cores if (cores > 1 and n_tiles % cores == 0) else 1   # parallel groups
    T = n_tiles // G                                           # tiles per group

    xp = _maybe_pad2d(x, (tm, Kp), jnp.bfloat16)
    w2p = _maybe_pad2d(w2, (Kp, N2p), jnp.bfloat16)
    b2p = _prep_bias(b2, N2p)
    w3p = _maybe_pad2d(w3, (N2p, N3p), jnp.bfloat16)
    b3p = _prep_bias(b3, N3p)

    vmem_need = (2 * tm * Kp * 2 + 2 * Kp * N2p * 2 + 2 * N2p * 4 +   # residents
                 2 * N2p * tn3 * 2 + 2 * tn3 * 4 +                    # streamed w3/b3
                 2 * tm * tn3 * 4 + tm * N2p * 2)                     # out + h scratch
    cost = pl.CostEstimate(
        flops=2 * tm * Kp * N2p * G + 2 * tm * N2p * N3p,
        transcendentals=0,
        bytes_accessed=(tm * Kp * 2 + Kp * N2p * 2 + N2p * N3p * 2 +
                        tm * N3p * 4 + N3p * 4))

    out = pl.pallas_call(
        _proj2_proj3_kernel,
        out_shape=jax.ShapeDtypeStruct((tm, N3p), jnp.float32),
        grid=(G, T),
        in_specs=[
            pl.BlockSpec((tm, Kp), lambda g, t: (0, 0)),         # resident
            pl.BlockSpec((Kp, N2p), lambda g, t: (0, 0)),        # resident
            pl.BlockSpec((1, N2p), lambda g, t: (0, 0)),         # resident
            pl.BlockSpec((N2p, tn3), lambda g, t: (0, g * T + t)),  # streamed w3
            pl.BlockSpec((1, tn3), lambda g, t: (0, g * T + t)),
        ],
        out_specs=pl.BlockSpec((tm, tn3), lambda g, t: (0, g * T + t)),
        scratch_shapes=[pltpu.VMEM((tm, N2p), jnp.bfloat16)],    # cached h
        compiler_params=pltpu.CompilerParams(
            dimension_semantics=("parallel", "arbitrary"),
            vmem_limit_bytes=_vmem_limit(vmem_need)),
        cost_estimate=cost,
    )(xp, w2p, b2p, w3p, b3p)
    return out[:M, :n_out]


# ---------------------------------------------------------------------------
# Pure-jnp references (same bf16 weight / f32-accumulate math as the kernels)
# ---------------------------------------------------------------------------
def _ref_linear_relu(x, w, b):
    y = jnp.dot(x.astype(jnp.bfloat16), w.astype(jnp.bfloat16),
                preferred_element_type=jnp.float32) + b.astype(jnp.float32)
    return jnp.maximum(y, 0.0)


def _ref_proj2_proj3(x, w2, b2, w3, b3):
    h = jnp.maximum(
        jnp.dot(x.astype(jnp.bfloat16), w2.astype(jnp.bfloat16),
                preferred_element_type=jnp.float32) + b2.astype(jnp.float32),
        0.0)
    return jnp.dot(h.astype(jnp.bfloat16), w3.astype(jnp.bfloat16),
                   preferred_element_type=jnp.float32) + b3.astype(jnp.float32)


# ---------------------------------------------------------------------------
# Model
# ---------------------------------------------------------------------------
class AudioProjModelPallas:
    def __init__(self, key, seq_len=5, seq_len_vf=12, blocks=12, channels=768,
                 intermediate_dim=512, output_dim=768, context_tokens=32,
                 norm_output_audio=False):
        if norm_output_audio:
            # TODO(synk): LayerNorm branch (norm_output_audio=True) not implemented;
            #             default module uses nn.Identity.
            raise NotImplementedError("norm_output_audio=True not supported")
        self.seq_len = seq_len
        self.blocks = blocks
        self.channels = channels
        self.input_dim = seq_len * blocks * channels
        self.input_dim_vf = seq_len_vf * blocks * channels
        self.intermediate_dim = intermediate_dim
        self.context_tokens = context_tokens
        self.output_dim = output_dim

        keys = jax.random.split(key, 8)
        s = 0.02
        # logical weights (in_features, out_features), bf16; biases f32.
        self.w1 = (jax.random.normal(keys[0], (self.input_dim, intermediate_dim)) * s).astype(jnp.bfloat16)
        self.b1 = (jax.random.normal(keys[1], (intermediate_dim,)) * s).astype(jnp.float32)
        self.w1_vf = (jax.random.normal(keys[2], (self.input_dim_vf, intermediate_dim)) * s).astype(jnp.bfloat16)
        self.b1_vf = (jax.random.normal(keys[3], (intermediate_dim,)) * s).astype(jnp.float32)
        self.w2 = (jax.random.normal(keys[4], (intermediate_dim, intermediate_dim)) * s).astype(jnp.bfloat16)
        self.b2 = (jax.random.normal(keys[5], (intermediate_dim,)) * s).astype(jnp.float32)
        self.w3 = (jax.random.normal(keys[6], (intermediate_dim, context_tokens * output_dim)) * s).astype(jnp.bfloat16)
        self.b3 = (jax.random.normal(keys[7], (context_tokens * output_dim,)) * s).astype(jnp.float32)

        # One-time pad/cast of kernel-side parameters (no per-call HBM copies).
        self.w1p, self.b1p = prepare_linear_params(self.w1, self.b1)
        self.w1_vfp, self.b1_vfp = prepare_linear_params(self.w1_vf, self.b1_vf)
        self.w2p, self.b2p = prepare_linear_params(self.w2, self.b2)
        self.w3p, self.b3p = prepare_linear_params(self.w3, self.b3)

    def __call__(self, audio_embeds, audio_embeds_vf):
        B, F1, W, Bl, C = audio_embeds.shape
        _, F2, Wvf, Blvf, Cvf = audio_embeds_vf.shape
        video_length = F1 + F2

        # 'bz f w b c -> (bz f) (w b c)'
        x1 = audio_embeds.reshape(B * F1, W * Bl * C)
        x2 = audio_embeds_vf.reshape(B * F2, Wvf * Blvf * Cvf)

        h1 = linear_relu(x1, self.w1p, self.b1p, n_out=self.intermediate_dim)
        h2 = linear_relu(x2, self.w1_vfp, self.b1_vfp, n_out=self.intermediate_dim)

        h1 = h1.reshape(B, F1, self.intermediate_dim)
        h2 = h2.reshape(B, F2, self.intermediate_dim)
        hc = jnp.concatenate([h1, h2], axis=1)            # (B, F1+F2, inter)
        hc = hc.reshape(B * video_length, self.intermediate_dim)

        out = proj2_proj3(hc, self.w2p, self.b2p, self.w3p, self.b3p,
                          n_out=self.context_tokens * self.output_dim)
        ctx = out.reshape(B, video_length, self.context_tokens, self.output_dim)
        # norm = Identity (norm_output_audio=False)
        return ctx

    def reference(self, audio_embeds, audio_embeds_vf):
        B, F1 = audio_embeds.shape[:2]
        F2 = audio_embeds_vf.shape[1]
        x1 = audio_embeds.reshape(B * F1, -1)
        x2 = audio_embeds_vf.reshape(B * F2, -1)
        h1 = _ref_linear_relu(x1, self.w1, self.b1).reshape(B, F1, -1)
        h2 = _ref_linear_relu(x2, self.w1_vf, self.b1_vf).reshape(B, F2, -1)
        hc = jnp.concatenate([h1, h2], axis=1).reshape(B * (F1 + F2), -1)
        out = _ref_proj2_proj3(hc, self.w2, self.b2, self.w3, self.b3)
        return out.reshape(B, F1 + F2, self.context_tokens, self.output_dim)


# ---------------------------------------------------------------------------
# Main
# ---------------------------------------------------------------------------
if __name__ == "__main__":
    key = jax.random.PRNGKey(0)
    k_model, k_a, k_b, k_x, k_w, k_w2, k_w3 = jax.random.split(key, 7)

    # small-but-consistent configuration
    seq_len, seq_len_vf = 5, 12
    blocks, channels = 2, 32
    intermediate_dim, output_dim, context_tokens = 64, 32, 8
    B, F1, F2 = 2, 2, 3

    model = AudioProjModelPallas(
        k_model, seq_len=seq_len, seq_len_vf=seq_len_vf, blocks=blocks,
        channels=channels, intermediate_dim=intermediate_dim,
        output_dim=output_dim, context_tokens=context_tokens,
        norm_output_audio=False)

    audio_embeds = jax.random.normal(k_a, (B, F1, seq_len, blocks, channels), dtype=jnp.float32)
    audio_embeds_vf = jax.random.normal(k_b, (B, F2, seq_len_vf, blocks, channels), dtype=jnp.float32)

    out = jax.block_until_ready(model(audio_embeds, audio_embeds_vf))
    ref = jax.block_until_ready(model.reference(audio_embeds, audio_embeds_vf))
    assert out.shape == (B, F1 + F2, context_tokens, output_dim), out.shape
    assert jnp.allclose(out, ref, atol=3e-3, rtol=3e-2), "mismatch vs reference (model)"

    # ---- extra check: exercise multi-tile grids (K-split reduction, N-split) ----
    M_t, K_t, N_t, N3_t = 10, 1280, 320, 1024
    xk = jax.random.normal(k_x, (M_t, K_t), dtype=jnp.float32)
    wk = (jax.random.normal(k_w, (K_t, N_t)) * 0.02).astype(jnp.bfloat16)
    bk = (jax.random.normal(k_w, (N_t,)) * 0.02).astype(jnp.float32)
    got = linear_relu(xk, wk, bk, tk_max=512, tn_max=128)       # multi-tile grid
    exp = _ref_linear_relu(xk, wk, bk)
    assert got.shape == exp.shape, (got.shape, exp.shape)
    assert jnp.allclose(got, exp, atol=5e-3, rtol=5e-3), "mismatch (tiled linear_relu)"

    w2k = (jax.random.normal(k_w2, (N_t, N_t)) * 0.02).astype(jnp.bfloat16)
    b2k = (jax.random.normal(k_w2, (N_t,)) * 0.02).astype(jnp.float32)
    w3k = (jax.random.normal(k_w3, (N_t, N3_t)) * 0.02).astype(jnp.bfloat16)
    b3k = (jax.random.normal(k_w3, (N3_t,)) * 0.02).astype(jnp.float32)
    got2 = proj2_proj3(got, w2k, b2k, w3k, b3k, tn3_max=256)    # multi-slab w3
    exp2 = _ref_proj2_proj3(exp, w2k, b2k, w3k, b3k)
    assert got2.shape == exp2.shape, (got2.shape, exp2.shape)
    assert jnp.allclose(got2, exp2, atol=5e-3, rtol=5e-3), "mismatch (tiled proj2_proj3)"

    print("KERNEL_OK")
</pallas_src>

<mosaic_0001>
module attributes {stable_mosaic.version = 11 : i64} {
  func.func @_linear_relu_kernel(%arg0: i32, %arg1: i32, %arg2: memref<16x384xbf16, #tpu.memory_space<vmem>>, %arg3: memref<384x128xbf16, #tpu.memory_space<vmem>>, %arg4: memref<1x128xf32, #tpu.memory_space<vmem>>, %arg5: memref<16x128xf32, #tpu.memory_space<vmem>>) attributes {dimension_semantics = [#tpu.dimension_semantics<parallel>, #tpu.dimension_semantics<arbitrary>], iteration_bounds = array<i64: 1, 1>, scalar_prefetch = 0 : i64, scratch_operands = 0 : i64, tpu.core_type = #tpu.core_type<tc>, window_params = [{transform_indices = @transform_0, window_bounds = array<i64: 16, 384>}, {transform_indices = @transform_1, window_bounds = array<i64: 384, 128>}, {transform_indices = @transform_2, window_bounds = array<i64: 1, 128>}, {transform_indices = @transform_3, window_bounds = array<i64: 16, 128>}]} {
    %c0_i32 = arith.constant 0 : i32
    %0 = arith.cmpi eq, %arg1, %c0_i32 : i32
    %1 = arith.extui %0 : i1 to i32
    %c0_i32_0 = arith.constant 0 : i32
    %2 = arith.cmpi ne, %1, %c0_i32_0 : i32
    scf.if %2 {
      %cst_10 = arith.constant 0.000000e+00 : f32
      %12 = vector.broadcast %cst_10 : f32 to vector<16x128xf32>
      %c0_11 = arith.constant 0 : index
      %c0_12 = arith.constant 0 : index
      %13 = vector.load %arg5[%c0_11, %c0_12] : memref<16x128xf32, #tpu.memory_space<vmem>>, vector<16x128xf32>
      tpu.vector_store %arg5[%c0_11, %c0_12], %12 {strides = array<i32>} : memref<16x128xf32, #tpu.memory_space<vmem>>, vector<16x128xf32>,
    } else {
    }
    %c0 = arith.constant 0 : index
    %c0_1 = arith.constant 0 : index
    %3 = vector.load %arg5[%c0, %c0_1] : memref<16x128xf32, #tpu.memory_space<vmem>>, vector<16x128xf32>
    %c0_2 = arith.constant 0 : index
    %c0_3 = arith.constant 0 : index
    %4 = vector.load %arg2[%c0_2, %c0_3] : memref<16x384xbf16, #tpu.memory_space<vmem>>, vector<16x384xbf16>
    %c0_4 = arith.constant 0 : index
    %c0_5 = arith.constant 0 : index
    %5 = vector.load %arg3[%c0_4, %c0_5] : memref<384x128xbf16, #tpu.memory_space<vmem>>, vector<384x128xbf16>
    %cst = arith.constant dense<0.000000e+00> : vector<16x128xf32>
    %6 = tpu.matmul %4, %5, %cst {dimension_numbers = #tpu.dot_dimension_numbers<[1], [0], [0], [1], [0, 0, 1, 1], [], []>} : vector<16x384xbf16>, vector<384x128xbf16>, vector<16x128xf32> -> vector<16x128xf32>
    %7 = arith.addf %3, %6 : vector<16x128xf32>
    %c0_6 = arith.constant 0 : index
    %c0_7 = arith.constant 0 : index
    %8 = vector.load %arg5[%c0_6, %c0_7] : memref<16x128xf32, #tpu.memory_space<vmem>>, vector<16x128xf32>
    tpu.vector_store %arg5[%c0_6, %c0_7], %7 {strides = array<i32>} : memref<16x128xf32, #tpu.memory_space<vmem>>, vector<16x128xf32>,
    %c0_i32_8 = arith.constant 0 : i32
    %9 = arith.cmpi eq, %arg1, %c0_i32_8 : i32
    %10 = arith.extui %9 : i1 to i32
    %c0_i32_9 = arith.constant 0 : i32
    %11 = arith.cmpi ne, %10, %c0_i32_9 : i32
    scf.if %11 {
      %c0_10 = arith.constant 0 : index
      %c0_11 = arith.constant 0 : index
      %12 = vector.load %arg5[%c0_10, %c0_11] : memref<16x128xf32, #tpu.memory_space<vmem>>, vector<16x128xf32>
      %c0_12 = arith.constant 0 : index
      %c0_13 = arith.constant 0 : index
      %13 = vector.load %arg4[%c0_12, %c0_13] : memref<1x128xf32, #tpu.memory_space<vmem>>, vector<1x128xf32>
      %14 = vector.broadcast %13 : vector<1x128xf32> to vector<16x128xf32>
      %15 = arith.addf %12, %14 : vector<16x128xf32>
      %cst_14 = arith.constant 0.000000e+00 : f32
      %16 = vector.broadcast %cst_14 : f32 to vector<16x128xf32>
      %17 = arith.maximumf %15, %16 : vector<16x128xf32>
      %c0_15 = arith.constant 0 : index
      %c0_16 = arith.constant 0 : index
      %18 = vector.load %arg5[%c0_15, %c0_16] : memref<16x128xf32, #tpu.memory_space<vmem>>, vector<16x128xf32>
      tpu.vector_store %arg5[%c0_15, %c0_16], %17 {strides = array<i32>} : memref<16x128xf32, #tpu.memory_space<vmem>>, vector<16x128xf32>,
    } else {
    }
    return
  }
  func.func @transform_0(%arg0: i32, %arg1: i32) -> (i32, i32) {
    %c0_i32 = arith.constant 0 : i32
    %c0_i32_0 = arith.constant 0 : i32
    return %c0_i32, %arg1 : i32, i32
  }
  func.func @transform_1(%arg0: i32, %arg1: i32) -> (i32, i32) {
    %c0_i32 = arith.constant 0 : i32
    return %arg1, %arg0 : i32, i32
  }
  func.func @transform_2(%arg0: i32, %arg1: i32) -> (i32, i32) {
    %c0_i32 = arith.constant 0 : i32
    %c0_i32_0 = arith.constant 0 : i32
    return %c0_i32, %arg0 : i32, i32
  }
  func.func @transform_3(%arg0: i32, %arg1: i32) -> (i32, i32) {
    %c0_i32 = arith.constant 0 : i32
    %c0_i32_0 = arith.constant 0 : i32
    return %c0_i32, %arg0 : i32, i32
  }
}

</mosaic_0001>

<bundles_post_ra>
// kernel: tpu_custom_call.1
= control target key start
LH: loop header
LB: loop body
LE: loop exit
PB: predicated region body
PF: predicated region fallthrough
CT: control target
= control target key end

     0   :  { %8 = vsyncpa [#allocation3], 0  ;;  %s646_s0 = inlined_call_operand.hbm [shape: bf16[16,384], index: 0, kind: input, shape index: {}]   ;;  %s647_s1 = inlined_call_operand.hbm [shape: bf16[384,128], index: 1, kind: input, shape index: {}]   ;;  %s648_s2 = inlined_call_operand.vmem [shape: f32[1,128], index: 2, kind: input, shape index: {}]   ;;  %s649_s3 = inlined_call_operand.hbm [shape: f32[16,128], index: 3, kind: output, shape index: {}]  }
   0x1   :  { %9 = vsyncpa [#allocation6], 0 }
   0x2   :  { %10 = vsyncpa [#allocation4], 0  ;;  %s576_s12 = smov [#allocation2]   ;;  %s504_s16 = scalar_lea.hbm %s646_s0, 384 }
   0x3   :  { %s16_s13 = sshll.u32 %s576_s12, 4  ;;  %p505_p0 = scmp.ne.s32.totalorder %s646_s0, %s504_s16  ;;  %s17_s13 = int_to_ptr.vmem [resolvable:$true] %s16_s13 }
   0x4   :  { %p508_p1 = scmp.lt.u32.totalorder %s504_s16, %s646_s0 }
   0x6   :  { %p510_p2 = pnand %p508_p1, %p505_p0 }
   0x8   :  { %513 = shalt.err (!%p510_p2)
}
   0x9   :  { %s514_s21 = scalar_lea.vmem %s17_s13, 384  ;;  %p519_p4 = scmp.lt.s32.totalorder %s17_s13, %s17_s13 }
   0xa   :  { %p515_p3 = scmp.ne.s32.totalorder %s17_s13, %s514_s21  ;;  %p520_p5 = scmp.lt.s32.totalorder %s514_s21, %s514_s21 }
   0xc   :  { %p521_p6 = por %p520_p5, %p519_p4 }
   0xe   :  { %p522_p7 = pnand %p521_p6, %p515_p3 }
  0x10   :  { %525 = shalt.err (!%p522_p7)
}
  0x11   :  { %s577_s22 = smov 192   ;;  %s578_s23 = smov 12  }
  0x12   :  { %22 = dma.hbm_to_vmem [thread:$0]  %s646_s0, 384, %s17_s13, [#allocation3], %s577_s22, %s577_s22, %s578_s23  }
  0x13   :  { %s579_s26 = smov [#allocation5]   ;;  %s526_s30 = scalar_lea.hbm %s647_s1, 3072 }
  0x14   :  { %s28_s27 = sshll.u32 %s579_s26, 4  ;;  %p527_p8 = scmp.ne.s32.totalorder %s647_s1, %s526_s30  ;;  %s29_s27 = int_to_ptr.vmem [resolvable:$true] %s28_s27 }
  0x15   :  { %p530_p9 = scmp.lt.u32.totalorder %s526_s30, %s647_s1 }
  0x17   :  { %p532_p10 = pnand %p530_p9, %p527_p8 }
  0x19   :  { %535 = shalt.err (!%p532_p10)
}
  0x1a   :  { %s536_s8 = scalar_lea.vmem %s29_s27, 3072  ;;  %p541_p12 = scmp.lt.s32.totalorder %s29_s27, %s29_s27 }
  0x1b   :  { %p537_p11 = scmp.ne.s32.totalorder %s29_s27, %s536_s8  ;;  %p542_p13 = scmp.lt.s32.totalorder %s536_s8, %s536_s8 }
  0x1d   :  { %p543_p0 = por %p542_p13, %p541_p12 }
  0x1f   :  { %p544_p1 = pnand %p543_p0, %p537_p11 }
  0x21   :  { %547 = shalt.err (!%p544_p1)
}
  0x22   :  { %s580_s0 = smov 64   ;;  %s581_s9 = smov 4  }
  0x23   :  { %34 = dma.hbm_to_vmem [thread:$0]  %s647_s1, 3072, %s29_s27, [#allocation6], %s580_s0, %s580_s0, %s581_s9  }
  0x24   :  { %570 = dma.done.wait [#allocation3], 384  }
  0x25   :  { %571 = vsyncadd [#allocation3], 4294966912 }
  0x26   :  { %572 = dma.done.wait [#allocation6], 3072  }
  0x27   :  { %573 = vsyncadd [#allocation6], 4294964224  ;;  %v582_v0 = vmov 0.0   ;;  %vm583_vm0 = vmmov 0   ;;  %v476_v1 = vld [vmem:[#allocation5 + $0x40] sm:$0xff]   ;;  %v479_v4 = vld [vmem:[#allocation5 + $0x48] sm:$0xff]  }
  0x28   :  { %445 = vmatprep.subr.bf16.mxu1 %v582_v0  ;;  %461 = vmatprep.mubr.msk.bf16.mxu1 %vm583_vm0, %v582_v0  ;;  %v477_v2 = vld [vmem:[#allocation5] sm:$0xff]   ;;  %v480_v5 = vld [vmem:[#allocation5 + $0x8] sm:$0xff]   ;;  %v482_v7 = vld [vmem:[#allocation5 + $0x50] sm:$0xff]   ;;  %s584_s13 = smov [#allocation7]  }
  0x29   :  { %414 = vmatprep.subr.bf16.mxu0 %v476_v1  ;;  %v478_v3 = vld [vmem:[#allocation5 + $0x80] sm:$0xff]   ;;  %v481_v6 = vld [vmem:[#allocation5 + $0x88] sm:$0xff]   ;;  %v483_v8 = vld [vmem:[#allocation5 + $0x10] sm:$0xff]   ;;  %s373_s14 = sshll.u32 %s584_s13, 4  ;;  %s374_s14 = int_to_ptr.vmem [resolvable:$true] %s373_s14 }
  0x2a   :  { %415 = vmatpush3.bf16.msra.mxu0 %v477_v2  ;;  %446 = vmatpush3.bf16.msra.mxu1 %v478_v3  ;;  %v484_v9 = vld [vmem:[#allocation5 + $0x90] sm:$0xff]   ;;  %v485_v10 = vld [vmem:[#allocation5 + $0x58] sm:$0xff]   ;;  %v488_v13 = vld [vmem:[#allocation5 + $0x60] sm:$0xff]   ;;  %s548_s15 = scalar_lea.vmem %s374_s14, 256  ;;  %p553_p3 = scmp.lt.s32.totalorder %s374_s14, %s374_s14 }
  0x2b   :  { %416 = vmatprep.subr.bf16.mxu0 %v479_v4  ;;  %447 = vmatprep.subr.bf16.mxu1 %v582_v0  ;;  %v486_v11 = vld [vmem:[#allocation5 + $0x18] sm:$0xff]   ;;  %v489_v14 = vld [vmem:[#allocation5 + $0x20] sm:$0xff]   ;;  %v491_v16 = vld [vmem:[#allocation5 + $0x68] sm:$0xff]   ;;  %p549_p2 = scmp.ne.s32.totalorder %s374_s14, %s548_s15  ;;  %p554_p4 = scmp.lt.s32.totalorder %s548_s15, %s548_s15 }
  0x2c   :  { %v487_v12 = vld [vmem:[#allocation5 + $0x98] sm:$0xff]   ;;  %v490_v15 = vld [vmem:[#allocation5 + $0xa0] sm:$0xff]   ;;  %v492_v17 = vld [vmem:[#allocation5 + $0x28] sm:$0xff]  }
  0x2d   :  { %v493_v18 = vld [vmem:[#allocation5 + $0xa8] sm:$0xff]   ;;  %v494_v19 = vld [vmem:[#allocation5 + $0x70] sm:$0xff]   ;;  %v497_v22 = vld [vmem:[#allocation5 + $0x78] sm:$0xff]   ;;  %p555_p5 = por %p554_p4, %p553_p3 }
  0x2e   :  { %417 = vmatpush3.bf16.msra.mxu0 %v480_v5  ;;  %448 = vmatpush3.bf16.msra.mxu1 %v481_v6  ;;  %v495_v20 = vld [vmem:[#allocation5 + $0x30] sm:$0xff]   ;;  %v502_v23 = vld [vmem:[#allocation2 + $0x4] ss:$12 sps:$4 sm:$0xff]   ;;  %v413_v39 = vld [vmem:[%s648_s2] ss:$0 sm:$0xff] }
  0x2f   :  { %418 = vmatprep.subr.bf16.mxu0 %v482_v7  ;;  %449 = vmatprep.subr.bf16.mxu1 %v582_v0  ;;  %v496_v21 = vld [vmem:[#allocation5 + $0xb0] sm:$0xff]   ;;  %v498_v24 = vld [vmem:[#allocation5 + $0x38] sm:$0xff]   ;;  %p556_p6 = pnand %p555_p5, %p549_p2 }
  0x30   :  { %296 = vmatprep.mubr.bf16.mxu0 %v502_v23  ;;  %v499_v25 = vld [vmem:[#allocation5 + $0xb8] sm:$0xff]   ;;  %v500_v26 = vld [vmem:[#allocation2] ss:$12 sps:$4 sm:$0xff]  }
  0x31   :  { %v503_v27 = vld [vmem:[#allocation2 + $0x8] ss:$12 sps:$4 sm:$0xff]  }
  0x32   :  { %419 = vmatpush3.bf16.msra.mxu0 %v483_v8  ;;  %450 = vmatpush3.bf16.msra.mxu1 %v484_v9 }
  0x33   :  { %420 = vmatprep.subr.bf16.mxu0 %v485_v10  ;;  %451 = vmatprep.subr.bf16.mxu1 %v582_v0 }
  0x36   :  { %421 = vmatpush3.bf16.msra.mxu0 %v486_v11  ;;  %452 = vmatpush3.bf16.msra.mxu1 %v487_v12 }
  0x37   :  { %422 = vmatprep.subr.bf16.mxu0 %v488_v13  ;;  %453 = vmatprep.subr.bf16.mxu1 %v582_v0 }
  0x3a   :  { %423 = vmatpush3.bf16.msra.mxu0 %v489_v14  ;;  %454 = vmatpush3.bf16.msra.mxu1 %v490_v15 }
  0x3b   :  { %424 = vmatprep.subr.bf16.mxu0 %v491_v16  ;;  %455 = vmatprep.subr.bf16.mxu1 %v582_v0 }
  0x3e   :  { %425 = vmatpush3.bf16.msra.mxu0 %v492_v17  ;;  %456 = vmatpush3.bf16.msra.mxu1 %v493_v18 }
  0x3f   :  { %426 = vmatprep.subr.bf16.mxu0 %v494_v19  ;;  %457 = vmatprep.subr.bf16.mxu1 %v582_v0 }
  0x42   :  { %427 = vmatpush3.bf16.msra.mxu0 %v495_v20  ;;  %458 = vmatpush3.bf16.msra.mxu1 %v496_v21 }
  0x43   :  { %428 = vmatprep.subr.bf16.mxu0 %v497_v22  ;;  %459 = vmatprep.subr.bf16.mxu1 %v582_v0 }
  0x46   :  { %429 = vmatpush3.bf16.msra.mxu0 %v498_v24  ;;  %460 = vmatpush3.bf16.msra.mxu1 %v499_v25 }
  0x49   :  { %297 = vmatmul.mubr.bf16.vlgmr.msra.gmra.mrb[0].mxu0 %v500_v26  ;;  %462 = vmatmul.mubr.bf16.vlgmr.msra.gmra.mrb[0].mxu1 %v503_v27 }
 0x11c   :  { %v430_v28 = vpop.f32.mrb[0].mxu0  ;;  %v339_v29 = vpop.f32.mrb[0].mxu1 }
 0x11d   :  { %v431_v30 = vpop.f32.mrb[1].mxu0  ;;  %v463_v32 = vpop.f32.mrb[1].mxu1 }
 0x11e   :  { %v432_v31 = vadd.f32 %v431_v30, %v430_v28  ;;  %v433_v33 = vpop.f32.mrb[2].mxu0  ;;  %v342_v34 = vpop.f32.mrb[2].mxu1 }
 0x11f   :  { %v434_v35 = vpop.f32.mrb[3].mxu0  ;;  %v464_v38 = vpop.f32.mrb[3].mxu1 }
 0x120   :  { %v340_v36 = vadd.f32 %v432_v31, %v339_v29  ;;  %v435_v37 = vadd.f32 %v434_v35, %v433_v33 }
 0x122   :  { %v343_v40 = vadd.f32 %v435_v37, %v342_v34  ;;  %v362_v41 = vadd.f32 %v413_v39, %v340_v36 }
 0x124   :  { %v363_v42 = vadd.f32 %v413_v39, %v343_v40  ;;  %v364_v43 = vmax.f32 %v362_v41, 0.0 }
 0x126   :  { %v365_v44 = vmax.f32 %v363_v42, 0.0  ;;  %366 = vst [vmem:[#allocation7] sm:$0xff] %v364_v43 }
 0x128   :  { %367 = vst [vmem:[#allocation7 + $0x8] sm:$0xff] %v365_v44 }
 0x129   :  { %559 = shalt.err (!%p556_p6)
}
 0x12a   :  { %s560_s2 = scalar_lea.hbm %s649_s3, 256 }
 0x12b   :  { %p561_p7 = scmp.ne.s32.totalorder %s649_s3, %s560_s2  ;;  %p564_p8 = scmp.lt.u32.totalorder %s560_s2, %s649_s3 }
 0x12d   :  { %p566_p9 = pnand %p564_p8, %p561_p7 }
 0x12f   :  { %569 = shalt.err (!%p566_p9)
}
 0x130   :  { %s585_s22 = smov 128   ;;  %s586_s23 = smov 8  }
 0x131   :  { %379 = dma.vmem_to_hbm [thread:$0]  %s374_s14, 256, %s649_s3, [#allocation4], %s585_s22, %s585_s22, %s586_s23  }
 0x132   :  { %574 = dma.done.wait [#allocation4], 256  }
 0x133   :  { %575 = vsyncadd [#allocation4], 4294967040 }
 0x134   :  { %383 = vsyncpa [#allocation3], 1 }
 0x135   :  { %384 = vsyncpa [#allocation6], 1 }
 0x136   :  { %385 = vsyncpa [#allocation4], 1 }

</bundles_post_ra>
